<compile_context>
chip_gen: v5e
topology: v5e:2x2
jax: 0.10.0
libtpu: 0.0.40
codegen_flags: <defaults>
</compile_context>

<pallas_src>
import jax
import jax.numpy as jnp
from jax.experimental import pallas as pl
from jax.experimental.pallas import tpu as pltpu


def sequential_ex_kernel(x_ref, w1_ref, b1_ref, w2_ref, b2_ref, o_ref):
    """One fused (NB, C, S_TILE, 128) tile of the SequentialEx residual block.

    x_ref        : (NB, C, S_TILE, 128) VMEM tile of the input (also `.orig`)
    w1_ref/b1_ref: (C, C) / (C,) f32 scalars in SMEM -- conv1x1 #1 + bias, ReLU
    w2_ref/b2_ref: (C, C) / (C,) f32 scalars in SMEM -- conv1x1 #2 + bias
    o_ref        : (NB, C, S_TILE, 128) output = conv2(relu(conv1(x))) + x
    """
    nb, c = x_ref.shape[0], x_ref.shape[1]
    for n in range(nb):
        # Load each channel slab once (dense (S_TILE, 128) vregs); f32 math.
        x_slabs = [x_ref[n, k].astype(jnp.float32) for k in range(c)]

        # Layer 1: 1x1 conv (C->C) + bias + ReLU as C*C unrolled scalar FMAs.
        h1 = []
        for j in range(c):
            acc = x_slabs[0] * w1_ref[0, j]
            for k in range(1, c):
                acc = acc + x_slabs[k] * w1_ref[k, j]
            h1.append(jnp.maximum(acc + b1_ref[j], 0.0))

        # Layer 2: 1x1 conv (C->C) + bias, then MergeLayer: add `.orig` (= x).
        for j in range(c):
            acc = h1[0] * w2_ref[0, j]
            for k in range(1, c):
                acc = acc + h1[k] * w2_ref[k, j]
            o_ref[n, j] = (acc + b2_ref[j] + x_slabs[j]).astype(o_ref.dtype)


def _largest_divisor(n, cap):
    for d in range(min(n, cap), 0, -1):
        if n % d == 0:
            return d
    return 1


def _largest_tile(s_pad, cap, sub_g):
    """Largest multiple-of-sub_g divisor of s_pad that is <= cap."""
    for s in range(min(cap, s_pad) // sub_g * sub_g, sub_g - 1, -sub_g):
        if s_pad % s == 0:
            return s
    return min(sub_g, s_pad)


def _plan_tiling(n, c, s, sub_g):
    """Choose (nb, s_tile, s_pad).

    nb     : batch elements per grid step (divides n)
    s_tile : spatial sublane-rows per step (divides s_pad; multiple of sub_g
             or equal to the full extent)
    s_pad  : s rounded up so s_tile tiles it exactly (zero-padded in wrapper)

    Budgeting uses the *padded* f32 footprint (C rounded to a sublane group,
    f32 accumulation) of one slab.  A ~2 MiB input slab keeps x + out
    double-buffered plus the f32 temporaries well under v7x's 64 MiB VMEM/TC
    while staying large enough to sit near the HBM roofline.
    """
    c_pad = -(-c // 8) * 8
    row_bytes = c_pad * 128 * 4          # padded f32 bytes per sublane row
    img_bytes = s * row_bytes
    slab_budget = 2 << 20
    min_steps = 4                        # DMA pipelining + v7x dual TensorCore

    # Tiny problem: one grid step over (nearly) everything; the ~0.35us
    # per-step overhead dominates, so amortize it over the whole batch.
    if n * img_bytes <= (1 << 20):
        return _largest_divisor(n, 8), s, s

    if img_bytes <= slab_budget:
        # Whole image per slab fits; grid primarily over batch.  Pack several
        # batch elements per step if it fits and still leaves >= min_steps.
        nb = 1
        for cand in range(min(n, 8, slab_budget // img_bytes), 1, -1):
            if n % cand == 0 and n // cand >= min_steps:
                nb = cand
                break
        if n // nb >= min_steps or s < 2 * sub_g:
            return nb, s, s
        # Not enough batch steps: split spatially to reach >= min_steps.
        tiles = -(-min_steps // n)
        s_pad = -(-s // sub_g) * sub_g
        cap = max(sub_g, (s_pad // tiles) // sub_g * sub_g)
        return 1, _largest_tile(s_pad, cap, sub_g), s_pad

    # Image bigger than the slab budget: spatial tiling (pad to sub_g rows).
    s_pad = -(-s // sub_g) * sub_g
    cap = max(sub_g, (slab_budget // row_bytes) // sub_g * sub_g)
    if n < min_steps:
        cap = min(cap, max(sub_g, (s_pad // min_steps) // sub_g * sub_g))
    return 1, _largest_tile(s_pad, cap, sub_g), s_pad


def sequential_ex_forward(x_nchw, w1, b1, w2, b2):
    """Pallas-backed forward of SequentialEx(conv1x1+relu, conv1x1, merge)."""
    N, C, H, W = x_nchw.shape
    HW = H * W
    itemsize = jnp.dtype(x_nchw.dtype).itemsize
    sub_g = max(8, 32 // itemsize)       # sublane group: 8 f32 / 16 bf16 / 32 i8

    S = pl.cdiv(HW, 128)                 # spatial sublane-rows (lane axis = 128)
    nb, s_tile, S_pad = _plan_tiling(N, C, S, sub_g)
    HW_pad = S_pad * 128

    # Channels-first, lane-dense layout: (N, C, S_pad, 128).  Per-channel
    # slabs are dense (sublane x lane); no HBM transpose, only reshape/pad.
    x3 = x_nchw.reshape(N, C, HW)
    if HW_pad != HW:
        x3 = jnp.pad(x3, ((0, 0), (0, 0), (0, HW_pad - HW)))
    x4 = x3.reshape(N, C, S_pad, 128)

    grid = (N // nb, S_pad // s_tile)
    blk = (nb, C, s_tile, 128)
    smem_spec = pl.BlockSpec(memory_space=pltpu.MemorySpace.SMEM)
    f32 = jnp.float32

    out4 = pl.pallas_call(
        sequential_ex_kernel,
        out_shape=jax.ShapeDtypeStruct((N, C, S_pad, 128), x4.dtype),
        grid_spec=pltpu.PrefetchScalarGridSpec(
            num_scalar_prefetch=0,
            grid=grid,
            in_specs=[
                pl.BlockSpec(blk, lambda n, s: (n, 0, s, 0)),  # x tile
                smem_spec,   # w1 (C, C) f32 scalars
                smem_spec,   # b1 (C,)
                smem_spec,   # w2 (C, C)
                smem_spec,   # b2 (C,)
            ],
            out_specs=pl.BlockSpec(blk, lambda n, s: (n, 0, s, 0)),
        ),
        compiler_params=pltpu.CompilerParams(
            dimension_semantics=("parallel", "parallel"),
            # ~2 MiB padded-f32 slabs double-buffered (in + out) plus f32
            # temporaries stay far below this; 48 MiB is safe on v7x
            # (64 MiB/TC) and leaves large headroom on v5e/v6e (128 MiB).
            vmem_limit_bytes=48 * 1024 * 1024,
        ),
    )(x4, w1.astype(f32), b1.astype(f32), w2.astype(f32), b2.astype(f32))

    out = out4.reshape(N, C, HW_pad)[:, :, :HW]
    return out.reshape(N, C, H, W)


def _reference_forward(x_nchw, w1, b1, w2, b2):
    """Pure-JAX reference mirroring the PyTorch SequentialEx semantics."""
    N, C, H, W = x_nchw.shape
    x = x_nchw.reshape(N, C, H * W).astype(jnp.float32)
    orig = x                                              # res.orig = x
    res = jnp.maximum(                                    # layer 1: conv1x1 + ReLU
        jnp.einsum("kj,nkl->njl", w1.astype(jnp.float32), x)
        + b1.astype(jnp.float32)[None, :, None], 0.0)
    res = (jnp.einsum("kj,nkl->njl", w2.astype(jnp.float32), res)  # layer 2
           + b2.astype(jnp.float32)[None, :, None])
    res = res + orig                                      # layer 3: MergeLayer
    return res.reshape(N, C, H, W).astype(x_nchw.dtype)


if __name__ == "__main__":
    key = jax.random.PRNGKey(0)
    k_x, k_w1, k_b1, k_w2, k_b2, k_x2, k_x3 = jax.random.split(key, 7)

    N, C, H, W = 2, 4, 16, 16
    w1 = jax.random.normal(k_w1, (C, C), dtype=jnp.float32) * 0.1
    b1 = jax.random.normal(k_b1, (C,), dtype=jnp.float32) * 0.1
    w2 = jax.random.normal(k_w2, (C, C), dtype=jnp.float32) * 0.1
    b2 = jax.random.normal(k_b2, (C,), dtype=jnp.float32) * 0.1

    # Primary small test (single-step, batch-blocked path).
    x = jax.random.normal(k_x, (N, C, H, W), dtype=jnp.float32)
    out = jax.block_until_ready(sequential_ex_forward(x, w1, b1, w2, b2))
    ref = _reference_forward(x, w1, b1, w2, b2)
    assert out.shape == (N, C, H, W)
    assert jnp.allclose(out, ref, atol=1e-5, rtol=1e-5), "mismatch (base case)"

    # Non-128-multiple spatial extent (exercises padding + slice-back).
    x2 = jax.random.normal(k_x2, (2, C, 10, 10), dtype=jnp.float32)
    out2 = jax.block_until_ready(sequential_ex_forward(x2, w1, b1, w2, b2))
    ref2 = _reference_forward(x2, w1, b1, w2, b2)
    assert jnp.allclose(out2, ref2, atol=1e-5, rtol=1e-5), "mismatch (padded case)"

    # Larger single image (exercises the spatially tiled multi-step path).
    x3 = jax.random.normal(k_x3, (1, C, 192, 192), dtype=jnp.float32)
    out3 = jax.block_until_ready(sequential_ex_forward(x3, w1, b1, w2, b2))
    ref3 = _reference_forward(x3, w1, b1, w2, b2)
    assert jnp.allclose(out3, ref3, atol=1e-4, rtol=1e-4), "mismatch (tiled case)"

    print("KERNEL_OK")
</pallas_src>

<mosaic_0001>
module attributes {stable_mosaic.version = 11 : i64} {
  func.func @sequential_ex_kernel(%arg0: i32, %arg1: i32, %arg2: memref<2x4x2x128xf32, #tpu.memory_space<vmem>>, %arg3: memref<4x4xf32, #tpu.memory_space<smem>>, %arg4: memref<4xf32, #tpu.memory_space<smem>>, %arg5: memref<4x4xf32, #tpu.memory_space<smem>>, %arg6: memref<4xf32, #tpu.memory_space<smem>>, %arg7: memref<2x4x2x128xf32, #tpu.memory_space<vmem>>) attributes {dimension_semantics = [#tpu.dimension_semantics<parallel>, #tpu.dimension_semantics<parallel>], iteration_bounds = array<i64: 1, 1>, scalar_prefetch = 0 : i64, scratch_operands = 0 : i64, tpu.core_type = #tpu.core_type<tc>, window_params = [{transform_indices = @transform_0, window_bounds = array<i64: 2, 4, 2, 128>}, {transform_indices = @transform_1, window_bounds = array<i64: 4, 4>}, {transform_indices = @transform_2, window_bounds = array<i64: 4>}, {transform_indices = @transform_3, window_bounds = array<i64: 4, 4>}, {transform_indices = @transform_4, window_bounds = array<i64: 4>}, {transform_indices = @transform_5, window_bounds = array<i64: 2, 4, 2, 128>}]} {
    %c0 = arith.constant 0 : index
    %c0_0 = arith.constant 0 : index
    %c0_1 = arith.constant 0 : index
    %c0_2 = arith.constant 0 : index
    %0 = vector.load %arg2[%c0, %c0_0, %c0_1, %c0_2] : memref<2x4x2x128xf32, #tpu.memory_space<vmem>>, vector<1x1x2x128xf32>
    %1 = vector.shape_cast %0 : vector<1x1x2x128xf32> to vector<2x128xf32>
    %c0_3 = arith.constant 0 : index
    %c1 = arith.constant 1 : index
    %c0_4 = arith.constant 0 : index
    %c0_5 = arith.constant 0 : index
    %2 = vector.load %arg2[%c0_3, %c1, %c0_4, %c0_5] : memref<2x4x2x128xf32, #tpu.memory_space<vmem>>, vector<1x1x2x128xf32>
    %3 = vector.shape_cast %2 : vector<1x1x2x128xf32> to vector<2x128xf32>
    %c0_6 = arith.constant 0 : index
    %c2 = arith.constant 2 : index
    %c0_7 = arith.constant 0 : index
    %c0_8 = arith.constant 0 : index
    %4 = vector.load %arg2[%c0_6, %c2, %c0_7, %c0_8] : memref<2x4x2x128xf32, #tpu.memory_space<vmem>>, vector<1x1x2x128xf32>
    %5 = vector.shape_cast %4 : vector<1x1x2x128xf32> to vector<2x128xf32>
    %c0_9 = arith.constant 0 : index
    %c3 = arith.constant 3 : index
    %c0_10 = arith.constant 0 : index
    %c0_11 = arith.constant 0 : index
    %6 = vector.load %arg2[%c0_9, %c3, %c0_10, %c0_11] : memref<2x4x2x128xf32, #tpu.memory_space<vmem>>, vector<1x1x2x128xf32>
    %7 = vector.shape_cast %6 : vector<1x1x2x128xf32> to vector<2x128xf32>
    %c0_12 = arith.constant 0 : index
    %c0_13 = arith.constant 0 : index
    %8 = memref.load %arg3[%c0_12, %c0_13] : memref<4x4xf32, #tpu.memory_space<smem>>
    %9 = vector.broadcast %8 : f32 to vector<2x128xf32>
    %10 = arith.mulf %1, %9 : vector<2x128xf32>
    %c1_14 = arith.constant 1 : index
    %c0_15 = arith.constant 0 : index
    %11 = memref.load %arg3[%c1_14, %c0_15] : memref<4x4xf32, #tpu.memory_space<smem>>
    %12 = vector.broadcast %11 : f32 to vector<2x128xf32>
    %13 = arith.mulf %3, %12 : vector<2x128xf32>
    %14 = arith.addf %10, %13 : vector<2x128xf32>
    %c2_16 = arith.constant 2 : index
    %c0_17 = arith.constant 0 : index
    %15 = memref.load %arg3[%c2_16, %c0_17] : memref<4x4xf32, #tpu.memory_space<smem>>
    %16 = vector.broadcast %15 : f32 to vector<2x128xf32>
    %17 = arith.mulf %5, %16 : vector<2x128xf32>
    %18 = arith.addf %14, %17 : vector<2x128xf32>
    %c3_18 = arith.constant 3 : index
    %c0_19 = arith.constant 0 : index
    %19 = memref.load %arg3[%c3_18, %c0_19] : memref<4x4xf32, #tpu.memory_space<smem>>
    %20 = vector.broadcast %19 : f32 to vector<2x128xf32>
    %21 = arith.mulf %7, %20 : vector<2x128xf32>
    %22 = arith.addf %18, %21 : vector<2x128xf32>
    %c0_20 = arith.constant 0 : index
    %23 = memref.load %arg4[%c0_20] : memref<4xf32, #tpu.memory_space<smem>>
    %24 = vector.broadcast %23 : f32 to vector<2x128xf32>
    %25 = arith.addf %22, %24 : vector<2x128xf32>
    %cst = arith.constant 0.000000e+00 : f32
    %26 = vector.broadcast %cst : f32 to vector<2x128xf32>
    %27 = arith.maximumf %25, %26 : vector<2x128xf32>
    %c0_21 = arith.constant 0 : index
    %c1_22 = arith.constant 1 : index
    %28 = memref.load %arg3[%c0_21, %c1_22] : memref<4x4xf32, #tpu.memory_space<smem>>
    %29 = vector.broadcast %28 : f32 to vector<2x128xf32>
    %30 = arith.mulf %1, %29 : vector<2x128xf32>
    %c1_23 = arith.constant 1 : index
    %c1_24 = arith.constant 1 : index
    %31 = memref.load %arg3[%c1_23, %c1_24] : memref<4x4xf32, #tpu.memory_space<smem>>
    %32 = vector.broadcast %31 : f32 to vector<2x128xf32>
    %33 = arith.mulf %3, %32 : vector<2x128xf32>
    %34 = arith.addf %30, %33 : vector<2x128xf32>
    %c2_25 = arith.constant 2 : index
    %c1_26 = arith.constant 1 : index
    %35 = memref.load %arg3[%c2_25, %c1_26] : memref<4x4xf32, #tpu.memory_space<smem>>
    %36 = vector.broadcast %35 : f32 to vector<2x128xf32>
    %37 = arith.mulf %5, %36 : vector<2x128xf32>
    %38 = arith.addf %34, %37 : vector<2x128xf32>
    %c3_27 = arith.constant 3 : index
    %c1_28 = arith.constant 1 : index
    %39 = memref.load %arg3[%c3_27, %c1_28] : memref<4x4xf32, #tpu.memory_space<smem>>
    %40 = vector.broadcast %39 : f32 to vector<2x128xf32>
    %41 = arith.mulf %7, %40 : vector<2x128xf32>
    %42 = arith.addf %38, %41 : vector<2x128xf32>
    %c1_29 = arith.constant 1 : index
    %43 = memref.load %arg4[%c1_29] : memref<4xf32, #tpu.memory_space<smem>>
    %44 = vector.broadcast %43 : f32 to vector<2x128xf32>
    %45 = arith.addf %42, %44 : vector<2x128xf32>
    %cst_30 = arith.constant 0.000000e+00 : f32
    %46 = vector.broadcast %cst_30 : f32 to vector<2x128xf32>
    %47 = arith.maximumf %45, %46 : vector<2x128xf32>
    %c0_31 = arith.constant 0 : index
    %c2_32 = arith.constant 2 : index
    %48 = memref.load %arg3[%c0_31, %c2_32] : memref<4x4xf32, #tpu.memory_space<smem>>
    %49 = vector.broadcast %48 : f32 to vector<2x128xf32>
    %50 = arith.mulf %1, %49 : vector<2x128xf32>
    %c1_33 = arith.constant 1 : index
    %c2_34 = arith.constant 2 : index
    %51 = memref.load %arg3[%c1_33, %c2_34] : memref<4x4xf32, #tpu.memory_space<smem>>
    %52 = vector.broadcast %51 : f32 to vector<2x128xf32>
    %53 = arith.mulf %3, %52 : vector<2x128xf32>
    %54 = arith.addf %50, %53 : vector<2x128xf32>
    %c2_35 = arith.constant 2 : index
    %c2_36 = arith.constant 2 : index
    %55 = memref.load %arg3[%c2_35, %c2_36] : memref<4x4xf32, #tpu.memory_space<smem>>
    %56 = vector.broadcast %55 : f32 to vector<2x128xf32>
    %57 = arith.mulf %5, %56 : vector<2x128xf32>
    %58 = arith.addf %54, %57 : vector<2x128xf32>
    %c3_37 = arith.constant 3 : index
    %c2_38 = arith.constant 2 : index
    %59 = memref.load %arg3[%c3_37, %c2_38] : memref<4x4xf32, #tpu.memory_space<smem>>
    %60 = vector.broadcast %59 : f32 to vector<2x128xf32>
    %61 = arith.mulf %7, %60 : vector<2x128xf32>
    %62 = arith.addf %58, %61 : vector<2x128xf32>
    %c2_39 = arith.constant 2 : index
    %63 = memref.load %arg4[%c2_39] : memref<4xf32, #tpu.memory_space<smem>>
    %64 = vector.broadcast %63 : f32 to vector<2x128xf32>
    %65 = arith.addf %62, %64 : vector<2x128xf32>
    %cst_40 = arith.constant 0.000000e+00 : f32
    %66 = vector.broadcast %cst_40 : f32 to vector<2x128xf32>
    %67 = arith.maximumf %65, %66 : vector<2x128xf32>
    %c0_41 = arith.constant 0 : index
    %c3_42 = arith.constant 3 : index
    %68 = memref.load %arg3[%c0_41, %c3_42] : memref<4x4xf32, #tpu.memory_space<smem>>
    %69 = vector.broadcast %68 : f32 to vector<2x128xf32>
    %70 = arith.mulf %1, %69 : vector<2x128xf32>
    %c1_43 = arith.constant 1 : index
    %c3_44 = arith.constant 3 : index
    %71 = memref.load %arg3[%c1_43, %c3_44] : memref<4x4xf32, #tpu.memory_space<smem>>
    %72 = vector.broadcast %71 : f32 to vector<2x128xf32>
    %73 = arith.mulf %3, %72 : vector<2x128xf32>
    %74 = arith.addf %70, %73 : vector<2x128xf32>
    %c2_45 = arith.constant 2 : index
    %c3_46 = arith.constant 3 : index
    %75 = memref.load %arg3[%c2_45, %c3_46] : memref<4x4xf32, #tpu.memory_space<smem>>
    %76 = vector.broadcast %75 : f32 to vector<2x128xf32>
    %77 = arith.mulf %5, %76 : vector<2x128xf32>
    %78 = arith.addf %74, %77 : vector<2x128xf32>
    %c3_47 = arith.constant 3 : index
    %c3_48 = arith.constant 3 : index
    %79 = memref.load %arg3[%c3_47, %c3_48] : memref<4x4xf32, #tpu.memory_space<smem>>
    %80 = vector.broadcast %79 : f32 to vector<2x128xf32>
    %81 = arith.mulf %7, %80 : vector<2x128xf32>
    %82 = arith.addf %78, %81 : vector<2x128xf32>
    %c3_49 = arith.constant 3 : index
    %83 = memref.load %arg4[%c3_49] : memref<4xf32, #tpu.memory_space<smem>>
    %84 = vector.broadcast %83 : f32 to vector<2x128xf32>
    %85 = arith.addf %82, %84 : vector<2x128xf32>
    %cst_50 = arith.constant 0.000000e+00 : f32
    %86 = vector.broadcast %cst_50 : f32 to vector<2x128xf32>
    %87 = arith.maximumf %85, %86 : vector<2x128xf32>
    %c0_51 = arith.constant 0 : index
    %c0_52 = arith.constant 0 : index
    %88 = memref.load %arg5[%c0_51, %c0_52] : memref<4x4xf32, #tpu.memory_space<smem>>
    %89 = vector.broadcast %88 : f32 to vector<2x128xf32>
    %90 = arith.mulf %27, %89 : vector<2x128xf32>
    %c1_53 = arith.constant 1 : index
    %c0_54 = arith.constant 0 : index
    %91 = memref.load %arg5[%c1_53, %c0_54] : memref<4x4xf32, #tpu.memory_space<smem>>
    %92 = vector.broadcast %91 : f32 to vector<2x128xf32>
    %93 = arith.mulf %47, %92 : vector<2x128xf32>
    %94 = arith.addf %90, %93 : vector<2x128xf32>
    %c2_55 = arith.constant 2 : index
    %c0_56 = arith.constant 0 : index
    %95 = memref.load %arg5[%c2_55, %c0_56] : memref<4x4xf32, #tpu.memory_space<smem>>
    %96 = vector.broadcast %95 : f32 to vector<2x128xf32>
    %97 = arith.mulf %67, %96 : vector<2x128xf32>
    %98 = arith.addf %94, %97 : vector<2x128xf32>
    %c3_57 = arith.constant 3 : index
    %c0_58 = arith.constant 0 : index
    %99 = memref.load %arg5[%c3_57, %c0_58] : memref<4x4xf32, #tpu.memory_space<smem>>
    %100 = vector.broadcast %99 : f32 to vector<2x128xf32>
    %101 = arith.mulf %87, %100 : vector<2x128xf32>
    %102 = arith.addf %98, %101 : vector<2x128xf32>
    %c0_59 = arith.constant 0 : index
    %103 = memref.load %arg6[%c0_59] : memref<4xf32, #tpu.memory_space<smem>>
    %104 = vector.broadcast %103 : f32 to vector<2x128xf32>
    %105 = arith.addf %102, %104 : vector<2x128xf32>
    %106 = arith.addf %105, %1 : vector<2x128xf32>
    %c0_60 = arith.constant 0 : index
    %c0_61 = arith.constant 0 : index
    %c0_62 = arith.constant 0 : index
    %c0_63 = arith.constant 0 : index
    %107 = vector.load %arg7[%c0_60, %c0_61, %c0_62, %c0_63] : memref<2x4x2x128xf32, #tpu.memory_space<vmem>>, vector<1x1x2x128xf32>
    %108 = vector.shape_cast %107 : vector<1x1x2x128xf32> to vector<2x128xf32>
    %109 = vector.shape_cast %106 : vector<2x128xf32> to vector<1x1x2x128xf32>
    tpu.vector_store %arg7[%c0_60, %c0_61, %c0_62, %c0_63], %109 {strides = array<i32>} : memref<2x4x2x128xf32, #tpu.memory_space<vmem>>, vector<1x1x2x128xf32>,
    %c0_64 = arith.constant 0 : index
    %c1_65 = arith.constant 1 : index
    %110 = memref.load %arg5[%c0_64, %c1_65] : memref<4x4xf32, #tpu.memory_space<smem>>
    %111 = vector.broadcast %110 : f32 to vector<2x128xf32>
    %112 = arith.mulf %27, %111 : vector<2x128xf32>
    %c1_66 = arith.constant 1 : index
    %c1_67 = arith.constant 1 : index
    %113 = memref.load %arg5[%c1_66, %c1_67] : memref<4x4xf32, #tpu.memory_space<smem>>
    %114 = vector.broadcast %113 : f32 to vector<2x128xf32>
    %115 = arith.mulf %47, %114 : vector<2x128xf32>
    %116 = arith.addf %112, %115 : vector<2x128xf32>
    %c2_68 = arith.constant 2 : index
    %c1_69 = arith.constant 1 : index
    %117 = memref.load %arg5[%c2_68, %c1_69] : memref<4x4xf32, #tpu.memory_space<smem>>
    %118 = vector.broadcast %117 : f32 to vector<2x128xf32>
    %119 = arith.mulf %67, %118 : vector<2x128xf32>
    %120 = arith.addf %116, %119 : vector<2x128xf32>
    %c3_70 = arith.constant 3 : index
    %c1_71 = arith.constant 1 : index
    %121 = memref.load %arg5[%c3_70, %c1_71] : memref<4x4xf32, #tpu.memory_space<smem>>
    %122 = vector.broadcast %121 : f32 to vector<2x128xf32>
    %123 = arith.mulf %87, %122 : vector<2x128xf32>
    %124 = arith.addf %120, %123 : vector<2x128xf32>
    %c1_72 = arith.constant 1 : index
    %125 = memref.load %arg6[%c1_72] : memref<4xf32, #tpu.memory_space<smem>>
    %126 = vector.broadcast %125 : f32 to vector<2x128xf32>
    %127 = arith.addf %124, %126 : vector<2x128xf32>
    %128 = arith.addf %127, %3 : vector<2x128xf32>
    %c0_73 = arith.constant 0 : index
    %c1_74 = arith.constant 1 : index
    %c0_75 = arith.constant 0 : index
    %c0_76 = arith.constant 0 : index
    %129 = vector.load %arg7[%c0_73, %c1_74, %c0_75, %c0_76] : memref<2x4x2x128xf32, #tpu.memory_space<vmem>>, vector<1x1x2x128xf32>
    %130 = vector.shape_cast %129 : vector<1x1x2x128xf32> to vector<2x128xf32>
    %131 = vector.shape_cast %128 : vector<2x128xf32> to vector<1x1x2x128xf32>
    tpu.vector_store %arg7[%c0_73, %c1_74, %c0_75, %c0_76], %131 {strides = array<i32>} : memref<2x4x2x128xf32, #tpu.memory_space<vmem>>, vector<1x1x2x128xf32>,
    %c0_77 = arith.constant 0 : index
    %c2_78 = arith.constant 2 : index
    %132 = memref.load %arg5[%c0_77, %c2_78] : memref<4x4xf32, #tpu.memory_space<smem>>
    %133 = vector.broadcast %132 : f32 to vector<2x128xf32>
    %134 = arith.mulf %27, %133 : vector<2x128xf32>
    %c1_79 = arith.constant 1 : index
    %c2_80 = arith.constant 2 : index
    %135 = memref.load %arg5[%c1_79, %c2_80] : memref<4x4xf32, #tpu.memory_space<smem>>
    %136 = vector.broadcast %135 : f32 to vector<2x128xf32>
    %137 = arith.mulf %47, %136 : vector<2x128xf32>
    %138 = arith.addf %134, %137 : vector<2x128xf32>
    %c2_81 = arith.constant 2 : index
    %c2_82 = arith.constant 2 : index
    %139 = memref.load %arg5[%c2_81, %c2_82] : memref<4x4xf32, #tpu.memory_space<smem>>
    %140 = vector.broadcast %139 : f32 to vector<2x128xf32>
    %141 = arith.mulf %67, %140 : vector<2x128xf32>
    %142 = arith.addf %138, %141 : vector<2x128xf32>
    %c3_83 = arith.constant 3 : index
    %c2_84 = arith.constant 2 : index
    %143 = memref.load %arg5[%c3_83, %c2_84] : memref<4x4xf32, #tpu.memory_space<smem>>
    %144 = vector.broadcast %143 : f32 to vector<2x128xf32>
    %145 = arith.mulf %87, %144 : vector<2x128xf32>
    %146 = arith.addf %142, %145 : vector<2x128xf32>
    %c2_85 = arith.constant 2 : index
    %147 = memref.load %arg6[%c2_85] : memref<4xf32, #tpu.memory_space<smem>>
    %148 = vector.broadcast %147 : f32 to vector<2x128xf32>
    %149 = arith.addf %146, %148 : vector<2x128xf32>
    %150 = arith.addf %149, %5 : vector<2x128xf32>
    %c0_86 = arith.constant 0 : index
    %c2_87 = arith.constant 2 : index
    %c0_88 = arith.constant 0 : index
    %c0_89 = arith.constant 0 : index
    %151 = vector.load %arg7[%c0_86, %c2_87, %c0_88, %c0_89] : memref<2x4x2x128xf32, #tpu.memory_space<vmem>>, vector<1x1x2x128xf32>
    %152 = vector.shape_cast %151 : vector<1x1x2x128xf32> to vector<2x128xf32>
    %153 = vector.shape_cast %150 : vector<2x128xf32> to vector<1x1x2x128xf32>
    tpu.vector_store %arg7[%c0_86, %c2_87, %c0_88, %c0_89], %153 {strides = array<i32>} : memref<2x4x2x128xf32, #tpu.memory_space<vmem>>, vector<1x1x2x128xf32>,
    %c0_90 = arith.constant 0 : index
    %c3_91 = arith.constant 3 : index
    %154 = memref.load %arg5[%c0_90, %c3_91] : memref<4x4xf32, #tpu.memory_space<smem>>
    %155 = vector.broadcast %154 : f32 to vector<2x128xf32>
    %156 = arith.mulf %27, %155 : vector<2x128xf32>
    %c1_92 = arith.constant 1 : index
    %c3_93 = arith.constant 3 : index
    %157 = memref.load %arg5[%c1_92, %c3_93] : memref<4x4xf32, #tpu.memory_space<smem>>
    %158 = vector.broadcast %157 : f32 to vector<2x128xf32>
    %159 = arith.mulf %47, %158 : vector<2x128xf32>
    %160 = arith.addf %156, %159 : vector<2x128xf32>
    %c2_94 = arith.constant 2 : index
    %c3_95 = arith.constant 3 : index
    %161 = memref.load %arg5[%c2_94, %c3_95] : memref<4x4xf32, #tpu.memory_space<smem>>
    %162 = vector.broadcast %161 : f32 to vector<2x128xf32>
    %163 = arith.mulf %67, %162 : vector<2x128xf32>
    %164 = arith.addf %160, %163 : vector<2x128xf32>
    %c3_96 = arith.constant 3 : index
    %c3_97 = arith.constant 3 : index
    %165 = memref.load %arg5[%c3_96, %c3_97] : memref<4x4xf32, #tpu.memory_space<smem>>
    %166 = vector.broadcast %165 : f32 to vector<2x128xf32>
    %167 = arith.mulf %87, %166 : vector<2x128xf32>
    %168 = arith.addf %164, %167 : vector<2x128xf32>
    %c3_98 = arith.constant 3 : index
    %169 = memref.load %arg6[%c3_98] : memref<4xf32, #tpu.memory_space<smem>>
    %170 = vector.broadcast %169 : f32 to vector<2x128xf32>
    %171 = arith.addf %168, %170 : vector<2x128xf32>
    %172 = arith.addf %171, %7 : vector<2x128xf32>
    %c0_99 = arith.constant 0 : index
    %c3_100 = arith.constant 3 : index
    %c0_101 = arith.constant 0 : index
    %c0_102 = arith.constant 0 : index
    %173 = vector.load %arg7[%c0_99, %c3_100, %c0_101, %c0_102] : memref<2x4x2x128xf32, #tpu.memory_space<vmem>>, vector<1x1x2x128xf32>
    %174 = vector.shape_cast %173 : vector<1x1x2x128xf32> to vector<2x128xf32>
    %175 = vector.shape_cast %172 : vector<2x128xf32> to vector<1x1x2x128xf32>
    tpu.vector_store %arg7[%c0_99, %c3_100, %c0_101, %c0_102], %175 {strides = array<i32>} : memref<2x4x2x128xf32, #tpu.memory_space<vmem>>, vector<1x1x2x128xf32>,
    %c1_103 = arith.constant 1 : index
    %c0_104 = arith.constant 0 : index
    %c0_105 = arith.constant 0 : index
    %c0_106 = arith.constant 0 : index
    %176 = vector.load %arg2[%c1_103, %c0_104, %c0_105, %c0_106] : memref<2x4x2x128xf32, #tpu.memory_space<vmem>>, vector<1x1x2x128xf32>
    %177 = vector.shape_cast %176 : vector<1x1x2x128xf32> to vector<2x128xf32>
    %c1_107 = arith.constant 1 : index
    %c1_108 = arith.constant 1 : index
    %c0_109 = arith.constant 0 : index
    %c0_110 = arith.constant 0 : index
    %178 = vector.load %arg2[%c1_107, %c1_108, %c0_109, %c0_110] : memref<2x4x2x128xf32, #tpu.memory_space<vmem>>, vector<1x1x2x128xf32>
    %179 = vector.shape_cast %178 : vector<1x1x2x128xf32> to vector<2x128xf32>
    %c1_111 = arith.constant 1 : index
    %c2_112 = arith.constant 2 : index
    %c0_113 = arith.constant 0 : index
    %c0_114 = arith.constant 0 : index
    %180 = vector.load %arg2[%c1_111, %c2_112, %c0_113, %c0_114] : memref<2x4x2x128xf32, #tpu.memory_space<vmem>>, vector<1x1x2x128xf32>
    %181 = vector.shape_cast %180 : vector<1x1x2x128xf32> to vector<2x128xf32>
    %c1_115 = arith.constant 1 : index
    %c3_116 = arith.constant 3 : index
    %c0_117 = arith.constant 0 : index
    %c0_118 = arith.constant 0 : index
    %182 = vector.load %arg2[%c1_115, %c3_116, %c0_117, %c0_118] : memref<2x4x2x128xf32, #tpu.memory_space<vmem>>, vector<1x1x2x128xf32>
    %183 = vector.shape_cast %182 : vector<1x1x2x128xf32> to vector<2x128xf32>
    %c0_119 = arith.constant 0 : index
    %c0_120 = arith.constant 0 : index
    %184 = memref.load %arg3[%c0_119, %c0_120] : memref<4x4xf32, #tpu.memory_space<smem>>
    %185 = vector.broadcast %184 : f32 to vector<2x128xf32>
    %186 = arith.mulf %177, %185 : vector<2x128xf32>
    %c1_121 = arith.constant 1 : index
    %c0_122 = arith.constant 0 : index
    %187 = memref.load %arg3[%c1_121, %c0_122] : memref<4x4xf32, #tpu.memory_space<smem>>
    %188 = vector.broadcast %187 : f32 to vector<2x128xf32>
    %189 = arith.mulf %179, %188 : vector<2x128xf32>
    %190 = arith.addf %186, %189 : vector<2x128xf32>
    %c2_123 = arith.constant 2 : index
    %c0_124 = arith.constant 0 : index
    %191 = memref.load %arg3[%c2_123, %c0_124] : memref<4x4xf32, #tpu.memory_space<smem>>
    %192 = vector.broadcast %191 : f32 to vector<2x128xf32>
    %193 = arith.mulf %181, %192 : vector<2x128xf32>
    %194 = arith.addf %190, %193 : vector<2x128xf32>
    %c3_125 = arith.constant 3 : index
    %c0_126 = arith.constant 0 : index
    %195 = memref.load %arg3[%c3_125, %c0_126] : memref<4x4xf32, #tpu.memory_space<smem>>
    %196 = vector.broadcast %195 : f32 to vector<2x128xf32>
    %197 = arith.mulf %183, %196 : vector<2x128xf32>
    %198 = arith.addf %194, %197 : vector<2x128xf32>
    %c0_127 = arith.constant 0 : index
    %199 = memref.load %arg4[%c0_127] : memref<4xf32, #tpu.memory_space<smem>>
    %200 = vector.broadcast %199 : f32 to vector<2x128xf32>
    %201 = arith.addf %198, %200 : vector<2x128xf32>
    %cst_128 = arith.constant 0.000000e+00 : f32
    %202 = vector.broadcast %cst_128 : f32 to vector<2x128xf32>
    %203 = arith.maximumf %201, %202 : vector<2x128xf32>
    %c0_129 = arith.constant 0 : index
    %c1_130 = arith.constant 1 : index
    %204 = memref.load %arg3[%c0_129, %c1_130] : memref<4x4xf32, #tpu.memory_space<smem>>
    %205 = vector.broadcast %204 : f32 to vector<2x128xf32>
    %206 = arith.mulf %177, %205 : vector<2x128xf32>
    %c1_131 = arith.constant 1 : index
    %c1_132 = arith.constant 1 : index
    %207 = memref.load %arg3[%c1_131, %c1_132] : memref<4x4xf32, #tpu.memory_space<smem>>
    %208 = vector.broadcast %207 : f32 to vector<2x128xf32>
    %209 = arith.mulf %179, %208 : vector<2x128xf32>
    %210 = arith.addf %206, %209 : vector<2x128xf32>
    %c2_133 = arith.constant 2 : index
    %c1_134 = arith.constant 1 : index
    %211 = memref.load %arg3[%c2_133, %c1_134] : memref<4x4xf32, #tpu.memory_space<smem>>
    %212 = vector.broadcast %211 : f32 to vector<2x128xf32>
    %213 = arith.mulf %181, %212 : vector<2x128xf32>
    %214 = arith.addf %210, %213 : vector<2x128xf32>
    %c3_135 = arith.constant 3 : index
    %c1_136 = arith.constant 1 : index
    %215 = memref.load %arg3[%c3_135, %c1_136] : memref<4x4xf32, #tpu.memory_space<smem>>
    %216 = vector.broadcast %215 : f32 to vector<2x128xf32>
    %217 = arith.mulf %183, %216 : vector<2x128xf32>
    %218 = arith.addf %214, %217 : vector<2x128xf32>
    %c1_137 = arith.constant 1 : index
    %219 = memref.load %arg4[%c1_137] : memref<4xf32, #tpu.memory_space<smem>>
    %220 = vector.broadcast %219 : f32 to vector<2x128xf32>
    %221 = arith.addf %218, %220 : vector<2x128xf32>
    %cst_138 = arith.constant 0.000000e+00 : f32
    %222 = vector.broadcast %cst_138 : f32 to vector<2x128xf32>
    %223 = arith.maximumf %221, %222 : vector<2x128xf32>
    %c0_139 = arith.constant 0 : index
    %c2_140 = arith.constant 2 : index
    %224 = memref.load %arg3[%c0_139, %c2_140] : memref<4x4xf32, #tpu.memory_space<smem>>
    %225 = vector.broadcast %224 : f32 to vector<2x128xf32>
    %226 = arith.mulf %177, %225 : vector<2x128xf32>
    %c1_141 = arith.constant 1 : index
    %c2_142 = arith.constant 2 : index
    %227 = memref.load %arg3[%c1_141, %c2_142] : memref<4x4xf32, #tpu.memory_space<smem>>
    %228 = vector.broadcast %227 : f32 to vector<2x128xf32>
    %229 = arith.mulf %179, %228 : vector<2x128xf32>
    %230 = arith.addf %226, %229 : vector<2x128xf32>
    %c2_143 = arith.constant 2 : index
    %c2_144 = arith.constant 2 : index
    %231 = memref.load %arg3[%c2_143, %c2_144] : memref<4x4xf32, #tpu.memory_space<smem>>
    %232 = vector.broadcast %231 : f32 to vector<2x128xf32>
    %233 = arith.mulf %181, %232 : vector<2x128xf32>
    %234 = arith.addf %230, %233 : vector<2x128xf32>
    %c3_145 = arith.constant 3 : index
    %c2_146 = arith.constant 2 : index
    %235 = memref.load %arg3[%c3_145, %c2_146] : memref<4x4xf32, #tpu.memory_space<smem>>
    %236 = vector.broadcast %235 : f32 to vector<2x128xf32>
    %237 = arith.mulf %183, %236 : vector<2x128xf32>
    %238 = arith.addf %234, %237 : vector<2x128xf32>
    %c2_147 = arith.constant 2 : index
    %239 = memref.load %arg4[%c2_147] : memref<4xf32, #tpu.memory_space<smem>>
    %240 = vector.broadcast %239 : f32 to vector<2x128xf32>
    %241 = arith.addf %238, %240 : vector<2x128xf32>
    %cst_148 = arith.constant 0.000000e+00 : f32
    %242 = vector.broadcast %cst_148 : f32 to vector<2x128xf32>
    %243 = arith.maximumf %241, %242 : vector<2x128xf32>
    %c0_149 = arith.constant 0 : index
    %c3_150 = arith.constant 3 : index
    %244 = memref.load %arg3[%c0_149, %c3_150] : memref<4x4xf32, #tpu.memory_space<smem>>
    %245 = vector.broadcast %244 : f32 to vector<2x128xf32>
    %246 = arith.mulf %177, %245 : vector<2x128xf32>
    %c1_151 = arith.constant 1 : index
    %c3_152 = arith.constant 3 : index
    %247 = memref.load %arg3[%c1_151, %c3_152] : memref<4x4xf32, #tpu.memory_space<smem>>
    %248 = vector.broadcast %247 : f32 to vector<2x128xf32>
    %249 = arith.mulf %179, %248 : vector<2x128xf32>
    %250 = arith.addf %246, %249 : vector<2x128xf32>
    %c2_153 = arith.constant 2 : index
    %c3_154 = arith.constant 3 : index
    %251 = memref.load %arg3[%c2_153, %c3_154] : memref<4x4xf32, #tpu.memory_space<smem>>
    %252 = vector.broadcast %251 : f32 to vector<2x128xf32>
    %253 = arith.mulf %181, %252 : vector<2x128xf32>
    %254 = arith.addf %250, %253 : vector<2x128xf32>
    %c3_155 = arith.constant 3 : index
    %c3_156 = arith.constant 3 : index
    %255 = memref.load %arg3[%c3_155, %c3_156] : memref<4x4xf32, #tpu.memory_space<smem>>
    %256 = vector.broadcast %255 : f32 to vector<2x128xf32>
    %257 = arith.mulf %183, %256 : vector<2x128xf32>
    %258 = arith.addf %254, %257 : vector<2x128xf32>
    %c3_157 = arith.constant 3 : index
    %259 = memref.load %arg4[%c3_157] : memref<4xf32, #tpu.memory_space<smem>>
    %260 = vector.broadcast %259 : f32 to vector<2x128xf32>
    %261 = arith.addf %258, %260 : vector<2x128xf32>
    %cst_158 = arith.constant 0.000000e+00 : f32
    %262 = vector.broadcast %cst_158 : f32 to vector<2x128xf32>
    %263 = arith.maximumf %261, %262 : vector<2x128xf32>
    %c0_159 = arith.constant 0 : index
    %c0_160 = arith.constant 0 : index
    %264 = memref.load %arg5[%c0_159, %c0_160] : memref<4x4xf32, #tpu.memory_space<smem>>
    %265 = vector.broadcast %264 : f32 to vector<2x128xf32>
    %266 = arith.mulf %203, %265 : vector<2x128xf32>
    %c1_161 = arith.constant 1 : index
    %c0_162 = arith.constant 0 : index
    %267 = memref.load %arg5[%c1_161, %c0_162] : memref<4x4xf32, #tpu.memory_space<smem>>
    %268 = vector.broadcast %267 : f32 to vector<2x128xf32>
    %269 = arith.mulf %223, %268 : vector<2x128xf32>
    %270 = arith.addf %266, %269 : vector<2x128xf32>
    %c2_163 = arith.constant 2 : index
    %c0_164 = arith.constant 0 : index
    %271 = memref.load %arg5[%c2_163, %c0_164] : memref<4x4xf32, #tpu.memory_space<smem>>
    %272 = vector.broadcast %271 : f32 to vector<2x128xf32>
    %273 = arith.mulf %243, %272 : vector<2x128xf32>
    %274 = arith.addf %270, %273 : vector<2x128xf32>
    %c3_165 = arith.constant 3 : index
    %c0_166 = arith.constant 0 : index
    %275 = memref.load %arg5[%c3_165, %c0_166] : memref<4x4xf32, #tpu.memory_space<smem>>
    %276 = vector.broadcast %275 : f32 to vector<2x128xf32>
    %277 = arith.mulf %263, %276 : vector<2x128xf32>
    %278 = arith.addf %274, %277 : vector<2x128xf32>
    %c0_167 = arith.constant 0 : index
    %279 = memref.load %arg6[%c0_167] : memref<4xf32, #tpu.memory_space<smem>>
    %280 = vector.broadcast %279 : f32 to vector<2x128xf32>
    %281 = arith.addf %278, %280 : vector<2x128xf32>
    %282 = arith.addf %281, %177 : vector<2x128xf32>
    %c1_168 = arith.constant 1 : index
    %c0_169 = arith.constant 0 : index
    %c0_170 = arith.constant 0 : index
    %c0_171 = arith.constant 0 : index
    %283 = vector.load %arg7[%c1_168, %c0_169, %c0_170, %c0_171] : memref<2x4x2x128xf32, #tpu.memory_space<vmem>>, vector<1x1x2x128xf32>
    %284 = vector.shape_cast %283 : vector<1x1x2x128xf32> to vector<2x128xf32>
    %285 = vector.shape_cast %282 : vector<2x128xf32> to vector<1x1x2x128xf32>
    tpu.vector_store %arg7[%c1_168, %c0_169, %c0_170, %c0_171], %285 {strides = array<i32>} : memref<2x4x2x128xf32, #tpu.memory_space<vmem>>, vector<1x1x2x128xf32>,
    %c0_172 = arith.constant 0 : index
    %c1_173 = arith.constant 1 : index
    %286 = memref.load %arg5[%c0_172, %c1_173] : memref<4x4xf32, #tpu.memory_space<smem>>
    %287 = vector.broadcast %286 : f32 to vector<2x128xf32>
    %288 = arith.mulf %203, %287 : vector<2x128xf32>
    %c1_174 = arith.constant 1 : index
    %c1_175 = arith.constant 1 : index
    %289 = memref.load %arg5[%c1_174, %c1_175] : memref<4x4xf32, #tpu.memory_space<smem>>
    %290 = vector.broadcast %289 : f32 to vector<2x128xf32>
    %291 = arith.mulf %223, %290 : vector<2x128xf32>
    %292 = arith.addf %288, %291 : vector<2x128xf32>
    %c2_176 = arith.constant 2 : index
    %c1_177 = arith.constant 1 : index
    %293 = memref.load %arg5[%c2_176, %c1_177] : memref<4x4xf32, #tpu.memory_space<smem>>
    %294 = vector.broadcast %293 : f32 to vector<2x128xf32>
    %295 = arith.mulf %243, %294 : vector<2x128xf32>
    %296 = arith.addf %292, %295 : vector<2x128xf32>
    %c3_178 = arith.constant 3 : index
    %c1_179 = arith.constant 1 : index
    %297 = memref.load %arg5[%c3_178, %c1_179] : memref<4x4xf32, #tpu.memory_space<smem>>
    %298 = vector.broadcast %297 : f32 to vector<2x128xf32>
    %299 = arith.mulf %263, %298 : vector<2x128xf32>
    %300 = arith.addf %296, %299 : vector<2x128xf32>
    %c1_180 = arith.constant 1 : index
    %301 = memref.load %arg6[%c1_180] : memref<4xf32, #tpu.memory_space<smem>>
    %302 = vector.broadcast %301 : f32 to vector<2x128xf32>
    %303 = arith.addf %300, %302 : vector<2x128xf32>
    %304 = arith.addf %303, %179 : vector<2x128xf32>
    %c1_181 = arith.constant 1 : index
    %c1_182 = arith.constant 1 : index
    %c0_183 = arith.constant 0 : index
    %c0_184 = arith.constant 0 : index
    %305 = vector.load %arg7[%c1_181, %c1_182, %c0_183, %c0_184] : memref<2x4x2x128xf32, #tpu.memory_space<vmem>>, vector<1x1x2x128xf32>
    %306 = vector.shape_cast %305 : vector<1x1x2x128xf32> to vector<2x128xf32>
    %307 = vector.shape_cast %304 : vector<2x128xf32> to vector<1x1x2x128xf32>
    tpu.vector_store %arg7[%c1_181, %c1_182, %c0_183, %c0_184], %307 {strides = array<i32>} : memref<2x4x2x128xf32, #tpu.memory_space<vmem>>, vector<1x1x2x128xf32>,
    %c0_185 = arith.constant 0 : index
    %c2_186 = arith.constant 2 : index
    %308 = memref.load %arg5[%c0_185, %c2_186] : memref<4x4xf32, #tpu.memory_space<smem>>
    %309 = vector.broadcast %308 : f32 to vector<2x128xf32>
    %310 = arith.mulf %203, %309 : vector<2x128xf32>
    %c1_187 = arith.constant 1 : index
    %c2_188 = arith.constant 2 : index
    %311 = memref.load %arg5[%c1_187, %c2_188] : memref<4x4xf32, #tpu.memory_space<smem>>
    %312 = vector.broadcast %311 : f32 to vector<2x128xf32>
    %313 = arith.mulf %223, %312 : vector<2x128xf32>
    %314 = arith.addf %310, %313 : vector<2x128xf32>
    %c2_189 = arith.constant 2 : index
    %c2_190 = arith.constant 2 : index
    %315 = memref.load %arg5[%c2_189, %c2_190] : memref<4x4xf32, #tpu.memory_space<smem>>
    %316 = vector.broadcast %315 : f32 to vector<2x128xf32>
    %317 = arith.mulf %243, %316 : vector<2x128xf32>
    %318 = arith.addf %314, %317 : vector<2x128xf32>
    %c3_191 = arith.constant 3 : index
    %c2_192 = arith.constant 2 : index
    %319 = memref.load %arg5[%c3_191, %c2_192] : memref<4x4xf32, #tpu.memory_space<smem>>
    %320 = vector.broadcast %319 : f32 to vector<2x128xf32>
    %321 = arith.mulf %263, %320 : vector<2x128xf32>
    %322 = arith.addf %318, %321 : vector<2x128xf32>
    %c2_193 = arith.constant 2 : index
    %323 = memref.load %arg6[%c2_193] : memref<4xf32, #tpu.memory_space<smem>>
    %324 = vector.broadcast %323 : f32 to vector<2x128xf32>
    %325 = arith.addf %322, %324 : vector<2x128xf32>
    %326 = arith.addf %325, %181 : vector<2x128xf32>
    %c1_194 = arith.constant 1 : index
    %c2_195 = arith.constant 2 : index
    %c0_196 = arith.constant 0 : index
    %c0_197 = arith.constant 0 : index
    %327 = vector.load %arg7[%c1_194, %c2_195, %c0_196, %c0_197] : memref<2x4x2x128xf32, #tpu.memory_space<vmem>>, vector<1x1x2x128xf32>
    %328 = vector.shape_cast %327 : vector<1x1x2x128xf32> to vector<2x128xf32>
    %329 = vector.shape_cast %326 : vector<2x128xf32> to vector<1x1x2x128xf32>
    tpu.vector_store %arg7[%c1_194, %c2_195, %c0_196, %c0_197], %329 {strides = array<i32>} : memref<2x4x2x128xf32, #tpu.memory_space<vmem>>, vector<1x1x2x128xf32>,
    %c0_198 = arith.constant 0 : index
    %c3_199 = arith.constant 3 : index
    %330 = memref.load %arg5[%c0_198, %c3_199] : memref<4x4xf32, #tpu.memory_space<smem>>
    %331 = vector.broadcast %330 : f32 to vector<2x128xf32>
    %332 = arith.mulf %203, %331 : vector<2x128xf32>
    %c1_200 = arith.constant 1 : index
    %c3_201 = arith.constant 3 : index
    %333 = memref.load %arg5[%c1_200, %c3_201] : memref<4x4xf32, #tpu.memory_space<smem>>
    %334 = vector.broadcast %333 : f32 to vector<2x128xf32>
    %335 = arith.mulf %223, %334 : vector<2x128xf32>
    %336 = arith.addf %332, %335 : vector<2x128xf32>
    %c2_202 = arith.constant 2 : index
    %c3_203 = arith.constant 3 : index
    %337 = memref.load %arg5[%c2_202, %c3_203] : memref<4x4xf32, #tpu.memory_space<smem>>
    %338 = vector.broadcast %337 : f32 to vector<2x128xf32>
    %339 = arith.mulf %243, %338 : vector<2x128xf32>
    %340 = arith.addf %336, %339 : vector<2x128xf32>
    %c3_204 = arith.constant 3 : index
    %c3_205 = arith.constant 3 : index
    %341 = memref.load %arg5[%c3_204, %c3_205] : memref<4x4xf32, #tpu.memory_space<smem>>
    %342 = vector.broadcast %341 : f32 to vector<2x128xf32>
    %343 = arith.mulf %263, %342 : vector<2x128xf32>
    %344 = arith.addf %340, %343 : vector<2x128xf32>
    %c3_206 = arith.constant 3 : index
    %345 = memref.load %arg6[%c3_206] : memref<4xf32, #tpu.memory_space<smem>>
    %346 = vector.broadcast %345 : f32 to vector<2x128xf32>
    %347 = arith.addf %344, %346 : vector<2x128xf32>
    %348 = arith.addf %347, %183 : vector<2x128xf32>
    %c1_207 = arith.constant 1 : index
    %c3_208 = arith.constant 3 : index
    %c0_209 = arith.constant 0 : index
    %c0_210 = arith.constant 0 : index
    %349 = vector.load %arg7[%c1_207, %c3_208, %c0_209, %c0_210] : memref<2x4x2x128xf32, #tpu.memory_space<vmem>>, vector<1x1x2x128xf32>
    %350 = vector.shape_cast %349 : vector<1x1x2x128xf32> to vector<2x128xf32>
    %351 = vector.shape_cast %348 : vector<2x128xf32> to vector<1x1x2x128xf32>
    tpu.vector_store %arg7[%c1_207, %c3_208, %c0_209, %c0_210], %351 {strides = array<i32>} : memref<2x4x2x128xf32, #tpu.memory_space<vmem>>, vector<1x1x2x128xf32>,
    return
  }
  func.func @transform_0(%arg0: i32, %arg1: i32) -> (i32, i32, i32, i32) {
    %c0_i32 = arith.constant 0 : i32
    %c0_i32_0 = arith.constant 0 : i32
    %c0_i32_1 = arith.constant 0 : i32
    return %arg0, %c0_i32, %arg1, %c0_i32_0 : i32, i32, i32, i32
  }
  func.func @transform_1(%arg0: i32, %arg1: i32) -> (i32, i32) {
    %c0_i32 = arith.constant 0 : i32
    %c0_i32_0 = arith.constant 0 : i32
    %c0_i32_1 = arith.constant 0 : i32
    return %c0_i32, %c0_i32_0 : i32, i32
  }
  func.func @transform_2(%arg0: i32, %arg1: i32) -> i32 {
    %c0_i32 = arith.constant 0 : i32
    %c0_i32_0 = arith.constant 0 : i32
    return %c0_i32 : i32
  }
  func.func @transform_3(%arg0: i32, %arg1: i32) -> (i32, i32) {
    %c0_i32 = arith.constant 0 : i32
    %c0_i32_0 = arith.constant 0 : i32
    %c0_i32_1 = arith.constant 0 : i32
    return %c0_i32, %c0_i32_0 : i32, i32
  }
  func.func @transform_4(%arg0: i32, %arg1: i32) -> i32 {
    %c0_i32 = arith.constant 0 : i32
    %c0_i32_0 = arith.constant 0 : i32
    return %c0_i32 : i32
  }
  func.func @transform_5(%arg0: i32, %arg1: i32) -> (i32, i32, i32, i32) {
    %c0_i32 = arith.constant 0 : i32
    %c0_i32_0 = arith.constant 0 : i32
    %c0_i32_1 = arith.constant 0 : i32
    return %arg0, %c0_i32, %arg1, %c0_i32_0 : i32, i32, i32, i32
  }
}

</mosaic_0001>

<bundles_post_ra>
// kernel: tpu_custom_call.1
= control target key start
LH: loop header
LB: loop body
LE: loop exit
PB: predicated region body
PF: predicated region fallthrough
CT: control target
= control target key end

     0   :  { %10 = vsyncpa [#allocation3], 0  ;;  %s912_s0 = inlined_call_operand.hbm [shape: f32[2,4,2,128], index: 0, kind: input, shape index: {}]   ;;  %s913_s1 = inlined_call_operand.hbm [shape: f32[4,4], index: 1, kind: input, shape index: {}]   ;;  %s914_s2 = inlined_call_operand.vmem [shape: f32[4], index: 2, kind: input, shape index: {}]   ;;  %s915_s3 = inlined_call_operand.hbm [shape: f32[4,4], index: 3, kind: input, shape index: {}]   ;;  %s916_s4 = inlined_call_operand.vmem [shape: f32[4], index: 4, kind: input, shape index: {}]   ;;  %s917_s5 = inlined_call_operand.hbm [shape: f32[2,4,2,128], index: 5, kind: output, shape index: {}]  }
   0x1   :  { %11 = vsyncpa [#allocation5], 0 }
   0x2   :  { %12 = vsyncpa [#allocation6], 0 }
   0x3   :  { %13 = vsyncpa [#allocation10], 0 }
   0x4   :  { %14 = vsyncpa [#allocation12], 0 }
   0x5   :  { %15 = vsyncpa [#allocation4], 0  ;;  %s20_s20 = sshll.u32 %s912_s0, 4  ;;  %s631_s21 = smov [#allocation2]   ;;  %s21_s20 = int_to_ptr.hbm [resolvable:$true] %s20_s20 }
   0x6   :  { %s22_s22 = sshll.u32 %s631_s21, 4  ;;  %s34_s25 = sshll.u32 %s913_s1, 4  ;;  %s23_s22 = int_to_ptr.vmem [resolvable:$true] %s22_s22  ;;  %s35_s25 = int_to_ptr.hbm [resolvable:$true] %s34_s25 }
   0x7   :  { %s632_s26 = smov 32   ;;  %s633_s27 = smov 2  }
   0x8   :  { %28 = dma.hbm_to_vmem [thread:$0]  %s21_s20, 256, %s23_s22, [#allocation3], %s632_s26, %s632_s26, %s633_s27  }
   0x9   :  { %s634_s28 = smov [#allocation7]   ;;  %s43_s0 = sshll.u32 %s914_s2, 4  ;;  %s44_s0 = int_to_ptr.vmem [resolvable:$true] %s43_s0 }
   0xa   :  { %37 = dma.hbm_to_smem %s35_s25, 64, %s634_s28, [#allocation5]  }
   0xb   :  { %s52_s8 = sshll.u32 %s915_s3, 4  ;;  %s635_s9 = smov [#allocation8]   ;;  %s53_s8 = int_to_ptr.hbm [resolvable:$true] %s52_s8 }
   0xc   :  { %46 = dma.vmem_to_smem %s44_s0, 16, %s635_s9, [#allocation6]  }
   0xd   :  { %s636_s1 = smov [#allocation9]   ;;  %s61_s12 = sshll.u32 %s916_s4, 4  ;;  %s62_s12 = int_to_ptr.vmem [resolvable:$true] %s61_s12 }
   0xe   :  { %55 = dma.hbm_to_smem %s53_s8, 64, %s636_s1, [#allocation10]  }
   0xf   :  { %s637_s13 = smov [#allocation11]  }
  0x10   :  { %64 = dma.vmem_to_smem %s62_s12, 16, %s637_s13, [#allocation12]  }
  0x11   :  { %619 = dma.done.wait [#allocation3], 256  }
  0x12   :  { %620 = vsyncadd [#allocation3], 4294967040 }
  0x13   :  { %621 = dma.done.wait [#allocation5], 64  }
  0x14   :  { %622 = vsyncadd [#allocation5], 4294967232 }
  0x15   :  { %623 = dma.done.wait [#allocation6], 16  }
  0x16   :  { %624 = vsyncadd [#allocation6], 4294967280 }
  0x17   :  { %625 = dma.done.wait [#allocation10], 64  }
  0x18   :  { %626 = vsyncadd [#allocation10], 4294967232 }
  0x19   :  { %627 = dma.done.wait [#allocation12], 16  }
  0x1a   :  { %628 = vsyncadd [#allocation12], 4294967280 }
  0x1b   :  { %85 = sfence }
  0x1c   :  { %s93_s2 = sld [smem:[#allocation7]]  ;;  %v689_v0 = vld [vmem:[#allocation2] sm:$0x3]  ;;  %v693_v1 = vld [vmem:[#allocation2 + $0x8] sm:$0x3] }
  0x1d   :  { %s443_s3 = sld [smem:[#allocation7 + $0x80]]  ;;  %v695_v2 = vld [vmem:[#allocation2 + $0x2] sm:$0x3]  ;;  %v699_v3 = vld [vmem:[#allocation2 + $0xa] sm:$0x3] }
  0x1e   :  { %s444_s14 = sld [smem:[#allocation7 + $0x100]]  ;;  %v701_v4 = vld [vmem:[#allocation2 + $0x4] sm:$0x3]  ;;  %v705_v6 = vld [vmem:[#allocation2 + $0xc] sm:$0x3] }
  0x1f   :  { %s687_s15 = sld [smem:[#allocation7 + $0x180]]  ;;  %v707_v7 = vld [vmem:[#allocation2 + $0x6] sm:$0x3]  ;;  %v716_v13 = vld [vmem:[#allocation2 + $0xe] sm:$0x3] }
  0x20   :  { %s691_s4 = sld [smem:[#allocation8]] }
  0x21   :  { %s697_s16 = sld [smem:[#allocation7 + $0x1]] }
  0x22   :  { %v94_v5 = vstv %s93_s2  ;;  %s703_s17 = sld [smem:[#allocation7 + $0x81]] }
  0x23   :  { %v95_v8 = vmul.f32 %v94_v5, %v689_v0  ;;  %v97_v9 = vstv %s443_s3  ;;  %s710_s18 = sld [smem:[#allocation7 + $0x101]]  ;;  %v262_v10 = vmul.f32 %v693_v1, %v94_v5 }
  0x24   :  { %v98_v11 = vmul.f32 %v97_v9, %v695_v2  ;;  %v101_v12 = vstv %s444_s14  ;;  %s714_s19 = sld [smem:[#allocation7 + $0x181]]  ;;  %v265_v14 = vmul.f32 %v699_v3, %v97_v9 }
  0x25   :  { %v102_v15 = vmul.f32 %v101_v12, %v701_v4  ;;  %v105_v16 = vstv %s687_s15  ;;  %s721_s20 = sld [smem:[#allocation8 + $0x1]]  ;;  %v269_v17 = vmul.f32 %v705_v6, %v101_v12 }
  0x26   :  { %v99_v18 = vadd.f32 %v98_v11, %v95_v8  ;;  %v106_v19 = vmul.f32 %v105_v16, %v707_v7  ;;  %s725_s21 = sld [smem:[#allocation7 + $0x2]]  ;;  %v266_v20 = vadd.f32 %v265_v14, %v262_v10  ;;  %v109_v21 = vstv %s691_s4 }
  0x27   :  { %v113_v22 = vstv %s697_s16  ;;  %s729_s22 = sld [smem:[#allocation7 + $0x82]]  ;;  %v273_v23 = vmul.f32 %v716_v13, %v105_v16 }
  0x28   :  { %v103_v24 = vadd.f32 %v102_v15, %v99_v18  ;;  %v114_v25 = vmul.f32 %v113_v22, %v689_v0  ;;  %v116_v26 = vstv %s703_s17  ;;  %s734_s23 = sld [smem:[#allocation7 + $0x102]]  ;;  %v270_v27 = vadd.f32 %v269_v17, %v266_v20 }
  0x29   :  { %v117_v28 = vmul.f32 %v116_v26, %v695_v2  ;;  %v120_v29 = vstv %s710_s18  ;;  %s738_s24 = sld [smem:[#allocation7 + $0x182]]  ;;  %v281_v30 = vmul.f32 %v693_v1, %v113_v22  ;;  %v284_v31 = vmul.f32 %v699_v3, %v116_v26 }
  0x2a   :  { %v107_v32 = vadd.f32 %v106_v19, %v103_v24  ;;  %v121_v33 = vmul.f32 %v120_v29, %v701_v4  ;;  %v124_v34 = vstv %s714_s19  ;;  %s744_s25 = sld [smem:[#allocation8 + $0x2]]  ;;  %v274_v35 = vadd.f32 %v273_v23, %v270_v27 }
  0x2b   :  { %v118_v36 = vadd.f32 %v117_v28, %v114_v25  ;;  %v125_v37 = vmul.f32 %v124_v34, %v707_v7  ;;  %v128_v38 = vstv %s721_s20  ;;  %s748_s28 = sld [smem:[#allocation7 + $0x3]]  ;;  %v285_v39 = vadd.f32 %v284_v31, %v281_v30 }
  0x2c   :  { %v110_v40 = vadd.f32 %v109_v21, %v107_v32  ;;  %v132_v41 = vstv %s725_s21  ;;  %s751_s29 = sld [smem:[#allocation7 + $0x83]]  ;;  %v277_v42 = vadd.f32 %v274_v35, %v109_v21  ;;  %v288_v43 = vmul.f32 %v705_v6, %v120_v29 }
  0x2d   :  { %v122_v44 = vadd.f32 %v121_v33, %v118_v36  ;;  %v133_v45 = vmul.f32 %v132_v41, %v689_v0  ;;  %v135_v46 = vstv %s729_s22  ;;  %s756_s30 = sld [smem:[#allocation7 + $0x103]]  ;;  %v292_v47 = vmul.f32 %v716_v13, %v124_v34 }
  0x2e   :  { %v759_v48 = vmax.f32 %v110_v40, 0.0  ;;  %v136_v49 = vmul.f32 %v135_v46, %v695_v2  ;;  %v139_v50 = vstv %s734_s23  ;;  %s763_s0 = sld [smem:[#allocation7 + $0x183]]  ;;  %v765_v51 = vmax.f32 %v277_v42, 0.0  ;;  %s638_s23 = smov [#allocation13]  }
  0x2f   :  { %v126_v52 = vadd.f32 %v125_v37, %v122_v44  ;;  %v140_v53 = vmul.f32 %v139_v50, %v701_v4  ;;  %v143_v54 = vstv %s738_s24  ;;  %s769_s6 = sld [smem:[#allocation8 + $0x3]]  ;;  %v289_v55 = vadd.f32 %v288_v43, %v285_v39  ;;  %s424_s24 = sshll.u32 %s638_s23, 4  ;;  %s425_s24 = int_to_ptr.vmem [resolvable:$true] %s424_s24 }
  0x30   :  { %v137_v56 = vadd.f32 %v136_v49, %v133_v45  ;;  %v144_v57 = vmul.f32 %v143_v54, %v707_v7  ;;  %v147_v58 = vstv %s744_s25  ;;  %s773_s7 = sld [smem:[#allocation9]]  ;;  %v300_v59 = vmul.f32 %v693_v1, %v132_v41 }
  0x31   :  { %v129_v60 = vadd.f32 %v128_v38, %v126_v52  ;;  %v151_v61 = vstv %s748_s28  ;;  %s777_s8 = sld [smem:[#allocation9 + $0x80]]  ;;  %v293_v62 = vadd.f32 %v292_v47, %v289_v55  ;;  %v303_v63 = vmul.f32 %v699_v3, %v135_v46 }
  0x32   :  { %v141_v5 = vadd.f32 %v140_v53, %v137_v56  ;;  %v152_v8 = vmul.f32 %v151_v61, %v689_v0  ;;  %v154_v9 = vstv %s751_s29  ;;  %s782_s9 = sld [smem:[#allocation9 + $0x100]]  ;;  %v307_v10 = vmul.f32 %v705_v6, %v139_v50  ;;  %s426_s29 = sshll.u32 %s917_s5, 4  ;;  %s427_s29 = int_to_ptr.hbm [resolvable:$true] %s426_s29 }
  0x33   :  { %v785_v11 = vmax.f32 %v129_v60, 0.0  ;;  %v155_v12 = vmul.f32 %v154_v9, %v695_v2  ;;  %v158_v14 = vstv %s756_s30  ;;  %s789_s1 = sld [smem:[#allocation9 + $0x180]]  ;;  %v296_v15 = vadd.f32 %v293_v62, %v128_v38 }
  0x34   :  { %v145_v16 = vadd.f32 %v144_v57, %v141_v5  ;;  %v159_v17 = vmul.f32 %v158_v14, %v701_v4  ;;  %v162_v18 = vstv %s763_s0  ;;  %s793_s10 = sld [smem:[#allocation11]]  ;;  %v304_v19 = vadd.f32 %v303_v63, %v300_v59 }
  0x35   :  { %v156_v20 = vadd.f32 %v155_v12, %v152_v8  ;;  %v163_v21 = vmul.f32 %v162_v18, %v707_v7  ;;  %v166_v22 = vstv %s769_s6  ;;  %s797_s11 = sld [smem:[#allocation9 + $0x1]]  ;;  %v799_v23 = vmax.f32 %v296_v15, 0.0 }
  0x36   :  { %v148_v24 = vadd.f32 %v147_v58, %v145_v16  ;;  %v170_v25 = vstv %s773_s7  ;;  %s802_s12 = sld [smem:[#allocation9 + $0x81]]  ;;  %v308_v26 = vadd.f32 %v307_v10, %v304_v19  ;;  %v311_v27 = vmul.f32 %v716_v13, %v143_v54 }
  0x37   :  { %v160_v28 = vadd.f32 %v159_v17, %v156_v20  ;;  %v171_v29 = vmul.f32 %v170_v25, %v759_v48  ;;  %v173_v30 = vstv %s777_s8  ;;  %s807_s13 = sld [smem:[#allocation9 + $0x101]]  ;;  %v319_v31 = vmul.f32 %v693_v1, %v151_v61 }
  0x38   :  { %v810_v32 = vmax.f32 %v148_v24, 0.0  ;;  %v174_v33 = vmul.f32 %v173_v30, %v785_v11  ;;  %v177_v34 = vstv %s782_s9  ;;  %s814_s2 = sld [smem:[#allocation9 + $0x181]]  ;;  %v312_v35 = vadd.f32 %v311_v27, %v308_v26 }
  0x39   :  { %v164_v36 = vadd.f32 %v163_v21, %v160_v28  ;;  %v181_v37 = vstv %s789_s1  ;;  %s817_s3 = sld [smem:[#allocation11 + $0x1]]  ;;  %v322_v38 = vmul.f32 %v699_v3, %v154_v9  ;;  %v326_v39 = vmul.f32 %v705_v6, %v158_v14 }
  0x3a   :  { %v175_v40 = vadd.f32 %v174_v33, %v171_v29  ;;  %v178_v41 = vmul.f32 %v177_v34, %v810_v32  ;;  %v185_v42 = vstv %s793_s10  ;;  %s823_s14 = sld [smem:[#allocation9 + $0x2]]  ;;  %v315_v43 = vadd.f32 %v312_v35, %v147_v58 }
  0x3b   :  { %v167_v44 = vadd.f32 %v166_v22, %v164_v36  ;;  %v190_v45 = vstv %s797_s11  ;;  %s828_s15 = sld [smem:[#allocation9 + $0x82]]  ;;  %v323_v46 = vadd.f32 %v322_v38, %v319_v31  ;;  %v330_v47 = vmul.f32 %v716_v13, %v162_v18 }
  0x3c   :  { %v179_v49 = vadd.f32 %v178_v41, %v175_v40  ;;  %v191_v50 = vmul.f32 %v190_v45, %v759_v48  ;;  %v193_v52 = vstv %s802_s12  ;;  %s833_s4 = sld [smem:[#allocation9 + $0x102]]  ;;  %v835_v53 = vmax.f32 %v315_v43, 0.0 }
  0x3d   :  { %v168_v54 = vmax.f32 %v167_v44, 0.0  ;;  %v194_v55 = vmul.f32 %v193_v52, %v785_v11  ;;  %v197_v56 = vstv %s807_s13  ;;  %s839_s16 = sld [smem:[#allocation9 + $0x182]]  ;;  %v327_v57 = vadd.f32 %v326_v39, %v323_v46 }
  0x3e   :  { %v198_v58 = vmul.f32 %v197_v56, %v810_v32  ;;  %v201_v59 = vstv %s814_s2  ;;  %s843_s17 = sld [smem:[#allocation11 + $0x2]]  ;;  %v338_v60 = vmul.f32 %v765_v51, %v170_v25  ;;  %v341_v61 = vmul.f32 %v799_v23, %v173_v30 }
  0x3f   :  { %v182_v62 = vmul.f32 %v181_v37, %v168_v54  ;;  %v195_v63 = vadd.f32 %v194_v55, %v191_v50  ;;  %v202_v5 = vmul.f32 %v201_v59, %v168_v54  ;;  %v205_v8 = vstv %s817_s3  ;;  %s850_s18 = sld [smem:[#allocation9 + $0x3]] }
  0x40   :  { %v211_v9 = vstv %s823_s14  ;;  %s853_s19 = sld [smem:[#allocation9 + $0x83]]  ;;  %v331_v10 = vadd.f32 %v330_v47, %v327_v57  ;;  %v342_v12 = vadd.f32 %v341_v61, %v338_v60  ;;  %v345_v14 = vmul.f32 %v835_v53, %v177_v34 }
  0x41   :  { %v183_v15 = vadd.f32 %v182_v62, %v179_v49  ;;  %v199_v16 = vadd.f32 %v198_v58, %v195_v63  ;;  %v212_v17 = vmul.f32 %v211_v9, %v759_v48  ;;  %v214_v18 = vstv %s828_s15  ;;  %s858_s20 = sld [smem:[#allocation9 + $0x103]] }
  0x42   :  { %v215_v19 = vmul.f32 %v214_v18, %v785_v11  ;;  %v218_v20 = vstv %s833_s4  ;;  %s862_s21 = sld [smem:[#allocation9 + $0x183]]  ;;  %v334_v21 = vadd.f32 %v331_v10, %v166_v22  ;;  %v346_v24 = vadd.f32 %v345_v14, %v342_v12 }
  0x43   :  { %v186_v25 = vadd.f32 %v185_v42, %v183_v15  ;;  %v203_v26 = vadd.f32 %v202_v5, %v199_v16  ;;  %v219_v27 = vmul.f32 %v218_v20, %v810_v32  ;;  %v222_v28 = vstv %s839_s16  ;;  %s870_s22 = sld [smem:[#allocation11 + $0x3]] }
  0x44   :  { %v216_v29 = vadd.f32 %v215_v19, %v212_v17  ;;  %v223_v30 = vmul.f32 %v222_v28, %v168_v54  ;;  %v226_v31 = vstv %s843_s17  ;;  %v335_v33 = vmax.f32 %v334_v21, 0.0 }
  0x45   :  { %v187_v34 = vadd.f32 %v186_v25, %v689_v0  ;;  %v206_v22 = vadd.f32 %v205_v8, %v203_v26  ;;  %v232_v35 = vstv %s850_s18  ;;  %v359_v36 = vmul.f32 %v765_v51, %v190_v45 }
  0x46   :  { %v220_v38 = vadd.f32 %v219_v27, %v216_v29  ;;  %v233_v39 = vmul.f32 %v232_v35, %v759_v48  ;;  %v235_v40 = vstv %s853_s19  ;;  %v349_v41 = vmul.f32 %v335_v33, %v181_v37 }
  0x47   :  { %188 = vst [vmem:[#allocation13] sm:$0x3] %v187_v34  ;;  %v207_v43 = vadd.f32 %v206_v22, %v695_v2  ;;  %v236_v44 = vmul.f32 %v235_v40, %v785_v11  ;;  %v239_v46 = vstv %s858_s20  ;;  %v362_v0 = vmul.f32 %v799_v23, %v193_v52 }
  0x48   :  { %v224_v47 = vadd.f32 %v223_v30, %v220_v38  ;;  %v240_v49 = vmul.f32 %v239_v46, %v810_v32  ;;  %v243_v45 = vstv %s862_s21  ;;  %v350_v50 = vadd.f32 %v349_v41, %v346_v24 }
  0x49   :  { %209 = vst [vmem:[#allocation13 + $0x2] sm:$0x3] %v207_v43  ;;  %v237_v55 = vadd.f32 %v236_v44, %v233_v39  ;;  %v244_v48 = vmul.f32 %v243_v45, %v168_v54  ;;  %v247_v57 = vstv %s870_s22  ;;  %v363_v58 = vadd.f32 %v362_v0, %v359_v36 }
  0x4a   :  { %v227_v37 = vadd.f32 %v226_v31, %v224_v47  ;;  %v353_v60 = vadd.f32 %v350_v50, %v185_v42  ;;  %v366_v2 = vmul.f32 %v835_v53, %v197_v56  ;;  %v370_v61 = vmul.f32 %v335_v33, %v201_v59 }
  0x4b   :  { %v241_v11 = vadd.f32 %v240_v49, %v237_v55  ;;  %v380_v62 = vmul.f32 %v765_v51, %v211_v9  ;;  %v383_v52 = vmul.f32 %v799_v23, %v214_v18  ;;  %v387_v32 = vmul.f32 %v835_v53, %v218_v20 }
  0x4c   :  { %v228_v63 = vadd.f32 %v227_v37, %v701_v4  ;;  %v354_v54 = vadd.f32 %v353_v60, %v693_v1  ;;  %v367_v5 = vadd.f32 %v366_v2, %v363_v58  ;;  %v391_v10 = vmul.f32 %v335_v33, %v222_v28 }
  0x4d   :  { %v245_v12 = vadd.f32 %v244_v48, %v241_v11  ;;  %v384_v14 = vadd.f32 %v383_v52, %v380_v62  ;;  %v401_v42 = vmul.f32 %v765_v51, %v232_v35  ;;  %v404_v56 = vmul.f32 %v799_v23, %v235_v40 }
  0x4e   :  { %230 = vst [vmem:[#allocation13 + $0x4] sm:$0x3] %v228_v63  ;;  %v371_v59 = vadd.f32 %v370_v61, %v367_v5  ;;  %v408_v9 = vmul.f32 %v835_v53, %v239_v46  ;;  %v412_v4 = vmul.f32 %v335_v33, %v243_v45 }
  0x4f   :  { %v248_v15 = vadd.f32 %v247_v57, %v245_v12  ;;  %356 = vst [vmem:[#allocation13 + $0x8] sm:$0x3] %v354_v54  ;;  %v388_v16 = vadd.f32 %v387_v32, %v384_v14  ;;  %v405_v17 = vadd.f32 %v404_v56, %v401_v42 }
  0x50   :  { %v374_v18 = vadd.f32 %v371_v59, %v205_v8 }
  0x51   :  { %v249_v1 = vadd.f32 %v248_v15, %v707_v7  ;;  %v392_v19 = vadd.f32 %v391_v10, %v388_v16  ;;  %v409_v20 = vadd.f32 %v408_v9, %v405_v17 }
  0x52   :  { %v375_v21 = vadd.f32 %v374_v18, %v699_v3 }
  0x53   :  { %251 = vst [vmem:[#allocation13 + $0x6] sm:$0x3] %v249_v1  ;;  %v395_v51 = vadd.f32 %v392_v19, %v226_v31  ;;  %v413_v23 = vadd.f32 %v412_v4, %v409_v20 }
  0x54   :  { %377 = vst [vmem:[#allocation13 + $0xa] sm:$0x3] %v375_v21 }
  0x55   :  { %v396_v53 = vadd.f32 %v395_v51, %v705_v6  ;;  %v416_v24 = vadd.f32 %v413_v23, %v247_v57 }
  0x57   :  { %398 = vst [vmem:[#allocation13 + $0xc] sm:$0x3] %v396_v53  ;;  %v417_v7 = vadd.f32 %v416_v24, %v716_v13 }
  0x59   :  { %419 = vst [vmem:[#allocation13 + $0xe] sm:$0x3] %v417_v7 }
  0x5a   :  { %432 = dma.vmem_to_hbm [thread:$0]  %s425_s24, 256, %s427_s29, [#allocation4], %s632_s26, %s632_s26, %s633_s27  }
  0x5b   :  { %629 = dma.done.wait [#allocation4], 256  }
  0x5c   :  { %630 = vsyncadd [#allocation4], 4294967040 }
  0x5d   :  { %437 = vsyncpa [#allocation3], 1 }
  0x5e   :  { %438 = vsyncpa [#allocation4], 1 }
  0x5f   :  { %439 = vsyncpa [#allocation5], 1 }
  0x60   :  { %440 = vsyncpa [#allocation10], 1 }
  0x61   :  { %441 = vsyncpa [#allocation6], 1 }
  0x62   :  { %442 = vsyncpa [#allocation12], 1 }

</bundles_post_ra>
